<compile_context>
chip_gen: v7x
topology: tpu7x:2x2x1
jax: 0.10.0
libtpu: 0.0.40
codegen_flags: <defaults>
</compile_context>

<pallas_src>
import jax
import jax.numpy as jnp
from jax.experimental import pallas as pl
from jax.experimental.pallas import tpu as pltpu


LATENT_DIMS = 32
INPUT_DIM = (1, 28, 28)                        # (C, H, W) like the PyTorch module
HIDDEN = 512
OUT_FEATURES = INPUT_DIM[1] * INPUT_DIM[2]     # 784
OUT_PADDED = 896                               # 7 * 128 -> lane-dense output tiles


def _round_up(x, m):
    return (x + m - 1) // m * m


def decoder_kernel(z_ref, w1_ref, b1_ref, w2_ref, b2_ref, o_ref):
    # z_ref : (TB, latent)      VMEM bf16
    # w1_ref: (latent, 512)     VMEM bf16   (resident across grid)
    # b1_ref: (1, 512)          VMEM f32    (resident across grid)
    # w2_ref: (512, 896)        VMEM bf16   (resident across grid)
    # b2_ref: (1, 896)          VMEM f32    (resident across grid)
    # o_ref : (TB, 896)         VMEM f32

    # Linear1 + ReLU  (MXU bf16 matmul, f32 accumulation)
    h = jnp.dot(z_ref[...], w1_ref[...], preferred_element_type=jnp.float32)
    h = jnp.maximum(h + b1_ref[...], 0.0)          # (TB,512) + (1,512) broadcast

    # Linear2 + sigmoid  (MXU bf16 matmul, f32 accumulation)
    y = jnp.dot(h.astype(jnp.bfloat16), w2_ref[...],
                preferred_element_type=jnp.float32)
    y = y + b2_ref[...]                            # (TB,896) + (1,896) broadcast
    o_ref[...] = jax.nn.sigmoid(y).astype(o_ref.dtype)


def decoder_forward(z, w1, b1, w2, b2, *, block_b=256):
    """Fused decoder forward. z: (B, latent) f32. Returns (B, 1, 28, 28) f32."""
    B = z.shape[0]

    # Batch tile: multiple of 8 sublanes, capped at block_b (MXU M dim fill).
    tb = min(block_b, _round_up(B, 8))
    b_pad = _round_up(B, tb)
    grid = (b_pad // tb,)

    # bf16 weights / activations (f32 accumulation happens inside the kernel).
    z_p = jnp.zeros((b_pad, LATENT_DIMS), jnp.bfloat16).at[:B].set(
        z.astype(jnp.bfloat16))
    w1_b = w1.astype(jnp.bfloat16)
    b1_f = b1.reshape(1, HIDDEN).astype(jnp.float32)
    # Pad the 784-wide output dim to 896 lanes (unmasked stores); slice it later.
    w2_b = jnp.zeros((HIDDEN, OUT_PADDED), jnp.bfloat16).at[:, :OUT_FEATURES].set(
        w2.astype(jnp.bfloat16))
    b2_f = jnp.zeros((1, OUT_PADDED), jnp.float32).at[:, :OUT_FEATURES].set(
        b2.reshape(1, OUT_FEATURES).astype(jnp.float32))

    flops = 2 * b_pad * (LATENT_DIMS * HIDDEN + HIDDEN * OUT_PADDED)
    bytes_accessed = (z_p.size * 2 + w1_b.size * 2 + w2_b.size * 2
                      + b1_f.size * 4 + b2_f.size * 4
                      + b_pad * OUT_PADDED * 4)

    out_flat = pl.pallas_call(
        decoder_kernel,
        out_shape=jax.ShapeDtypeStruct((b_pad, OUT_PADDED), jnp.float32),
        grid_spec=pl.GridSpec(
            grid=grid,
            in_specs=[
                pl.BlockSpec((tb, LATENT_DIMS), lambda i: (i, 0)),     # z tile
                pl.BlockSpec((LATENT_DIMS, HIDDEN), lambda i: (0, 0)), # W1 resident
                pl.BlockSpec((1, HIDDEN), lambda i: (0, 0)),           # b1 resident
                pl.BlockSpec((HIDDEN, OUT_PADDED), lambda i: (0, 0)),  # W2 resident
                pl.BlockSpec((1, OUT_PADDED), lambda i: (0, 0)),       # b2 resident
            ],
            out_specs=pl.BlockSpec((tb, OUT_PADDED), lambda i: (i, 0)),
        ),
        compiler_params=pltpu.CompilerParams(
            dimension_semantics=("parallel",),            # independent batch tiles
            vmem_limit_bytes=32 * 1024 * 1024,            # fits v7x's 64 MiB VMEM
        ),
        cost_estimate=pl.CostEstimate(
            flops=flops,
            transcendentals=b_pad * OUT_PADDED,           # sigmoid exp
            bytes_accessed=bytes_accessed,
        ),
    )(z_p, w1_b, b1_f, w2_b, b2_f)

    # Glue: drop batch/lane padding, reshape to NCHW like torch's reshape.
    return out_flat[:B, :OUT_FEATURES].reshape((-1,) + INPUT_DIM)


def init_params(key):
    """Deterministic init mimicking nn.Linear default (U(-1/sqrt(fan_in), ...))."""
    k1, k2, k3, k4 = jax.random.split(key, 4)
    lim1 = 1.0 / jnp.sqrt(LATENT_DIMS)
    lim2 = 1.0 / jnp.sqrt(HIDDEN)
    # Stored as (in, out) so the kernel does z @ W (equivalent to torch's x @ W.T).
    w1 = jax.random.uniform(k1, (LATENT_DIMS, HIDDEN), jnp.float32, -lim1, lim1)
    b1 = jax.random.uniform(k2, (HIDDEN,), jnp.float32, -lim1, lim1)
    w2 = jax.random.uniform(k3, (HIDDEN, OUT_FEATURES), jnp.float32, -lim2, lim2)
    b2 = jax.random.uniform(k4, (OUT_FEATURES,), jnp.float32, -lim2, lim2)
    return w1, b1, w2, b2


if __name__ == "__main__":
    key = jax.random.PRNGKey(0)
    k_z, k_p = jax.random.split(key)

    B = 8
    z = jax.random.normal(k_z, (B, LATENT_DIMS), jnp.float32)
    w1, b1, w2, b2 = init_params(k_p)

    out = decoder_forward(z, w1, b1, w2, b2)
    out = jax.block_until_ready(out)

    # Reference with the same bf16 weight quantization + f32 accumulation.
    z_b = z.astype(jnp.bfloat16)
    w1_b = w1.astype(jnp.bfloat16)
    w2_b = w2.astype(jnp.bfloat16)
    h_ref = jnp.maximum(
        jnp.dot(z_b, w1_b, preferred_element_type=jnp.float32) + b1[None, :], 0.0)
    y_ref = jnp.dot(h_ref.astype(jnp.bfloat16), w2_b,
                    preferred_element_type=jnp.float32) + b2[None, :]
    ref = jax.nn.sigmoid(y_ref).reshape((-1,) + INPUT_DIM)

    assert out.shape == (B,) + INPUT_DIM
    assert jnp.allclose(out, ref, atol=1e-3, rtol=1e-3), (
        float(jnp.max(jnp.abs(out - ref))))

    print("KERNEL_OK")
</pallas_src>

<mosaic_0001>
module attributes {stable_mosaic.version = 11 : i64} {
  func.func @decoder_kernel(%arg0: i32, %arg1: memref<8x32xbf16, #tpu.memory_space<vmem>>, %arg2: memref<32x512xbf16, #tpu.memory_space<vmem>>, %arg3: memref<1x512xf32, #tpu.memory_space<vmem>>, %arg4: memref<512x896xbf16, #tpu.memory_space<vmem>>, %arg5: memref<1x896xf32, #tpu.memory_space<vmem>>, %arg6: memref<8x896xf32, #tpu.memory_space<vmem>>) attributes {dimension_semantics = [#tpu.dimension_semantics<parallel>], iteration_bounds = array<i64: 1>, scalar_prefetch = 0 : i64, scratch_operands = 0 : i64, tpu.core_type = #tpu.core_type<tc>, window_params = [{transform_indices = @transform_0, window_bounds = array<i64: 8, 32>}, {pipeline_mode = #tpu.pipeline_mode<synchronous>, transform_indices = @transform_1, window_bounds = array<i64: 32, 512>}, {pipeline_mode = #tpu.pipeline_mode<synchronous>, transform_indices = @transform_2, window_bounds = array<i64: 1, 512>}, {pipeline_mode = #tpu.pipeline_mode<synchronous>, transform_indices = @transform_3, window_bounds = array<i64: 512, 896>}, {pipeline_mode = #tpu.pipeline_mode<synchronous>, transform_indices = @transform_4, window_bounds = array<i64: 1, 896>}, {transform_indices = @transform_5, window_bounds = array<i64: 8, 896>}]} {
    %c0 = arith.constant 0 : index
    %c0_0 = arith.constant 0 : index
    %0 = vector.load %arg1[%c0, %c0_0] : memref<8x32xbf16, #tpu.memory_space<vmem>>, vector<8x32xbf16>
    %c0_1 = arith.constant 0 : index
    %c0_2 = arith.constant 0 : index
    %1 = vector.load %arg2[%c0_1, %c0_2] : memref<32x512xbf16, #tpu.memory_space<vmem>>, vector<32x512xbf16>
    %cst = arith.constant dense<0.000000e+00> : vector<8x512xf32>
    %2 = tpu.matmul %0, %1, %cst {dimension_numbers = #tpu.dot_dimension_numbers<[1], [0], [0], [1], [0, 0, 1, 1], [], []>} : vector<8x32xbf16>, vector<32x512xbf16>, vector<8x512xf32> -> vector<8x512xf32>
    %c0_3 = arith.constant 0 : index
    %c0_4 = arith.constant 0 : index
    %3 = vector.load %arg3[%c0_3, %c0_4] : memref<1x512xf32, #tpu.memory_space<vmem>>, vector<1x512xf32>
    %4 = vector.broadcast %3 : vector<1x512xf32> to vector<8x512xf32>
    %5 = arith.addf %2, %4 : vector<8x512xf32>
    %cst_5 = arith.constant 0.000000e+00 : f32
    %6 = vector.broadcast %cst_5 : f32 to vector<8x512xf32>
    %7 = arith.maximumf %5, %6 : vector<8x512xf32>
    %8 = arith.truncf %7 : vector<8x512xf32> to vector<8x512xbf16>
    %c0_6 = arith.constant 0 : index
    %c0_7 = arith.constant 0 : index
    %9 = vector.load %arg4[%c0_6, %c0_7] : memref<512x896xbf16, #tpu.memory_space<vmem>>, vector<512x896xbf16>
    %cst_8 = arith.constant dense<0.000000e+00> : vector<8x896xf32>
    %10 = tpu.matmul %8, %9, %cst_8 {dimension_numbers = #tpu.dot_dimension_numbers<[1], [0], [0], [1], [0, 0, 1, 1], [], []>} : vector<8x512xbf16>, vector<512x896xbf16>, vector<8x896xf32> -> vector<8x896xf32>
    %c0_9 = arith.constant 0 : index
    %c0_10 = arith.constant 0 : index
    %11 = vector.load %arg5[%c0_9, %c0_10] : memref<1x896xf32, #tpu.memory_space<vmem>>, vector<1x896xf32>
    %12 = vector.broadcast %11 : vector<1x896xf32> to vector<8x896xf32>
    %13 = arith.addf %10, %12 : vector<8x896xf32>
    %14 = arith.negf %13 : vector<8x896xf32>
    %15 = math.exp %14 : vector<8x896xf32>
    %cst_11 = arith.constant 1.000000e+00 : f32
    %16 = vector.broadcast %cst_11 : f32 to vector<8x896xf32>
    %17 = arith.addf %16, %15 : vector<8x896xf32>
    %18 = arith.divf %16, %17 : vector<8x896xf32>
    %c0_12 = arith.constant 0 : index
    %c0_13 = arith.constant 0 : index
    %19 = vector.load %arg6[%c0_12, %c0_13] : memref<8x896xf32, #tpu.memory_space<vmem>>, vector<8x896xf32>
    tpu.vector_store %arg6[%c0_12, %c0_13], %18 {strides = array<i32>} : memref<8x896xf32, #tpu.memory_space<vmem>>, vector<8x896xf32>,
    return
  }
  func.func @transform_0(%arg0: i32) -> (i32, i32) {
    %c0_i32 = arith.constant 0 : i32
    %c0_i32_0 = arith.constant 0 : i32
    return %arg0, %c0_i32 : i32, i32
  }
  func.func @transform_1(%arg0: i32) -> (i32, i32) {
    %c0_i32 = arith.constant 0 : i32
    %c0_i32_0 = arith.constant 0 : i32
    %c0_i32_1 = arith.constant 0 : i32
    return %c0_i32, %c0_i32_0 : i32, i32
  }
  func.func @transform_2(%arg0: i32) -> (i32, i32) {
    %c0_i32 = arith.constant 0 : i32
    %c0_i32_0 = arith.constant 0 : i32
    %c0_i32_1 = arith.constant 0 : i32
    return %c0_i32, %c0_i32_0 : i32, i32
  }
  func.func @transform_3(%arg0: i32) -> (i32, i32) {
    %c0_i32 = arith.constant 0 : i32
    %c0_i32_0 = arith.constant 0 : i32
    %c0_i32_1 = arith.constant 0 : i32
    return %c0_i32, %c0_i32_0 : i32, i32
  }
  func.func @transform_4(%arg0: i32) -> (i32, i32) {
    %c0_i32 = arith.constant 0 : i32
    %c0_i32_0 = arith.constant 0 : i32
    %c0_i32_1 = arith.constant 0 : i32
    return %c0_i32, %c0_i32_0 : i32, i32
  }
  func.func @transform_5(%arg0: i32) -> (i32, i32) {
    %c0_i32 = arith.constant 0 : i32
    %c0_i32_0 = arith.constant 0 : i32
    return %arg0, %c0_i32 : i32, i32
  }
}

</mosaic_0001>

<bundles_post_ra>
// kernel: tpu_custom_call.1
= control target key start
LH: loop header
LB: loop body
LE: loop exit
PB: predicated region body
PF: predicated region fallthrough
CT: control target
= control target key end

     0   :  { %10 = vsyncpa [#allocation3], 0  ;;  %s2990_s0 = inlined_call_operand.hbm [shape: bf16[8,32], index: 0, kind: input, shape index: {}]   ;;  %s2991_s1 = inlined_call_operand.hbm [shape: bf16[32,512], index: 1, kind: input, shape index: {}]   ;;  %s2992_s2 = inlined_call_operand.vmem [shape: f32[1,512], index: 2, kind: input, shape index: {}]   ;;  %s2993_s3 = inlined_call_operand.hbm [shape: bf16[512,896], index: 3, kind: input, shape index: {}]   ;;  %s2994_s4 = inlined_call_operand.vmem [shape: f32[1,896], index: 4, kind: input, shape index: {}]   ;;  %s2995_s5 = inlined_call_operand.hbm [shape: f32[8,896], index: 5, kind: output, shape index: {}]  }
   0x1   :  { %11 = vsyncpa [#allocation6], 0 }
   0x2   :  { %12 = vsyncpa [#allocation4], 0  ;;  %s2828_s18 = smov [#allocation5]   ;;  %s2734_s22 = scalar_lea.hbm %s2991_s1, 1024 }
   0x3   :  { %s28_s19 = sshll.u32 %s2828_s18, 4  ;;  %p2735_p0 = scmp.ne.s32.totalorder %s2991_s1, %s2734_s22  ;;  %s29_s19 = int_to_ptr.vmem [resolvable:$true] %s28_s19 }
   0x4   :  { %p2738_p1 = scmp.lt.u32.totalorder %s2734_s22, %s2991_s1 }
   0x6   :  { %p2740_p2 = pnand %p2738_p1, %p2735_p0 }
   0x8   :  { %2743 = shalt.err (!%p2740_p2)
}
   0x9   :  { %s2744_s27 = scalar_lea.vmem %s29_s19, 1024  ;;  %p2749_p4 = scmp.lt.s32.totalorder %s29_s19, %s29_s19 }
   0xa   :  { %p2745_p3 = scmp.ne.s32.totalorder %s29_s19, %s2744_s27  ;;  %p2750_p5 = scmp.lt.s32.totalorder %s2744_s27, %s2744_s27 }
   0xc   :  { %p2751_p6 = por %p2750_p5, %p2749_p4 }
   0xe   :  { %p2752_p7 = pnand %p2751_p6, %p2745_p3 }
  0x10   :  { %2755 = shalt.err (!%p2752_p7)
}
  0x11   :  { %s2829_s28 = smov 256   ;;  %s2830_s29 = smov 16  }
  0x12   :  { %34 = dma.hbm_to_vmem [thread:$0]  %s2991_s1, 1024, %s29_s19, [#allocation6], %s2829_s28, %s2829_s28, %s2830_s29  }
  0x13   :  { %s2831_s7 = smov [#allocation2]   ;;  %s2832_s9 = smov [#allocation7]  }
  0x14   :  { %s19_s8 = sshll.u32 %s2831_s7, 4  ;;  %s42_s10 = sshll.u32 %s2832_s9, 4  ;;  %s20_s8 = int_to_ptr.vmem [resolvable:$true] %s19_s8  ;;  %s43_s10 = int_to_ptr.vmem [resolvable:$true] %s42_s10 }
  0x15   :  { %s2756_s13 = scalar_lea.hbm %s2990_s0, 64 }
  0x16   :  { %p2757_p8 = scmp.ne.s32.totalorder %s2990_s0, %s2756_s13  ;;  %p2760_p9 = scmp.lt.u32.totalorder %s2756_s13, %s2990_s0 }
  0x18   :  { %p2762_p10 = pnand %p2760_p9, %p2757_p8 }
  0x1a   :  { %2765 = shalt.err (!%p2762_p10)
}
  0x1b   :  { %s2766_s1 = scalar_lea.vmem %s20_s8, 64  ;;  %p2771_p12 = scmp.lt.s32.totalorder %s20_s8, %s20_s8 }
  0x1c   :  { %p2767_p11 = scmp.ne.s32.totalorder %s20_s8, %s2766_s1  ;;  %p2772_p13 = scmp.lt.s32.totalorder %s2766_s1, %s2766_s1 }
  0x1e   :  { %p2773_p0 = por %p2772_p13, %p2771_p12 }
  0x20   :  { %p2774_p1 = pnand %p2773_p0, %p2767_p11 }
  0x22   :  { %2777 = shalt.err (!%p2774_p1)
}
  0x23   :  { %22 = dma.hbm_to_vmem [thread:$0]  %s2990_s0, 64, %s20_s8, [#allocation3]  }
  0x24   :  { %s2778_s22 = scalar_lea.hbm %s2993_s3, 28672 }
  0x25   :  { %p2779_p2 = scmp.ne.s32.totalorder %s2993_s3, %s2778_s22  ;;  %p2782_p3 = scmp.lt.u32.totalorder %s2778_s22, %s2993_s3 }
  0x27   :  { %p2784_p4 = pnand %p2782_p3, %p2779_p2 }
  0x29   :  { %2787 = shalt.err (!%p2784_p4)
}
  0x2a   :  { %s2788_s27 = scalar_lea.vmem %s43_s10, 28672  ;;  %p2793_p6 = scmp.lt.s32.totalorder %s43_s10, %s43_s10 }
  0x2b   :  { %p2789_p5 = scmp.ne.s32.totalorder %s43_s10, %s2788_s27  ;;  %p2794_p7 = scmp.lt.s32.totalorder %s2788_s27, %s2788_s27 }
  0x2d   :  { %p2795_p8 = por %p2794_p7, %p2793_p6 }
  0x2f   :  { %p2796_p9 = pnand %p2795_p8, %p2789_p5 }
  0x31   :  { %2799 = shalt.err (!%p2796_p9)
}
  0x32   :  { %s2833_s0 = smov 448   ;;  %s2834_s28 = smov 28  }
  0x33   :  { %48 = dma.hbm_to_vmem [thread:$0]  %s2993_s3, 28672, %s43_s10, [#allocation6], %s2833_s0, %s2833_s0, %s2834_s28  }
  0x34   :  { %2822 = dma.done.wait [#allocation3], 64  }
  0x35   :  { %2823 = vsyncadd [#allocation3], 4294967232 }
  0x36   :  { %2824 = dma.done.wait [#allocation6], 29696  }
  0x37   :  { %2825 = vsyncadd [#allocation6], 4294937600  ;;  %v2835_v0 = vmov 0   ;;  %v2374_v1 = vld [vmem:[#allocation5 + $0x4] ss:$16 sps:$4 sm:$0xff]   ;;  %vm132_vm0 = vcmask 261120  }
  0x38   :  { %168 = vmatprep.mubr.bf16.mxu1 %v2835_v0  ;;  %v2376_v2 = vld [vmem:[#allocation5] ss:$16 sps:$4 sm:$0xff]   ;;  %136 = vmatprep.subr.bf16.mxu1 %v2374_v1  ;;  %v2377_v3 = vld [vmem:[#allocation5 + $0x24] ss:$16 sps:$4 sm:$0xff]   ;;  %v2382_v5 = vld [vmem:[#allocation5 + $0xc] ss:$16 sps:$4 sm:$0xff]  }
  0x39   :  { %137 = vmatpush1.bf16.msra.mxu1 %v2376_v2  ;;  %v2379_v4 = vld [vmem:[#allocation5 + $0x20] ss:$16 sps:$4 sm:$0xff]   ;;  %v61_v6 = vld [vmem:[#allocation2] sm:$0xf]  ;;  %v2380_v8 = vld [vmem:[#allocation5 + $0x8] ss:$16 sps:$4 sm:$0xff]  }
  0x3a   :  { %138 = vmatprep.subr.bf16.mxu1 %v2377_v3  ;;  %v2386_v7 = vld [vmem:[#allocation7 + $0x4] ss:$28 sps:$4 sm:$0xff]   ;;  %v2385_v9 = vld [vmem:[#allocation5 + $0x2c] ss:$16 sps:$4 sm:$0xff]   ;;  %v2383_v12 = vld [vmem:[#allocation5 + $0x28] ss:$16 sps:$4 sm:$0xff]  }
  0x3b   :  { %1671 = vmatprep.subr.bf16.mxu0 %v2386_v7  ;;  %v2391_v10 = vld [vmem:[#allocation7] ss:$28 sps:$4 sm:$0xff]   ;;  %v2397_v13 = vld [vmem:[#allocation7 + $0x38] ss:$28 sps:$4 sm:$0xff]   ;;  %v2390_v15 = vld [vmem:[#allocation7 + $0xc] ss:$28 sps:$4 sm:$0xff]  }
  0x3c   :  { %v2392_v11 = vld [vmem:[#allocation7 + $0x3c] ss:$28 sps:$4 sm:$0xff]   ;;  %1672 = vmatpush1.bf16.msra.mxu0 %v2391_v10  ;;  %v2398_v14 = vld [vmem:[#allocation7 + $0x74] ss:$28 sps:$4 sm:$0xff]   ;;  %v2388_v17 = vld [vmem:[#allocation7 + $0x8] ss:$28 sps:$4 sm:$0xff]  }
  0x3d   :  { %139 = vmatpush1.bf16.msra.mxu1 %v2379_v4  ;;  %1673 = vmatprep.subr.bf16.mxu0 %v2392_v11  ;;  %v2403_v16 = vld [vmem:[#allocation7 + $0x70] ss:$28 sps:$4 sm:$0xff]   ;;  %v2396_v19 = vld [vmem:[#allocation7 + $0x44] ss:$28 sps:$4 sm:$0xff]   ;;  %v2402_v23 = vld [vmem:[#allocation7 + $0x7c] ss:$28 sps:$4 sm:$0xff]  }
  0x3e   :  { %177 = vmatprep.subr.bf16.mxu1 %v2382_v5  ;;  %v2404_v18 = vld [vmem:[#allocation7 + $0xac] ss:$28 sps:$4 sm:$0xff]   ;;  %v2394_v20 = vld [vmem:[#allocation7 + $0x40] ss:$28 sps:$4 sm:$0xff]   ;;  %v2400_v25 = vld [vmem:[#allocation7 + $0x78] ss:$28 sps:$4 sm:$0xff]  }
  0x3f   :  { %v2409_v21 = vld [vmem:[#allocation7 + $0xa8] ss:$28 sps:$4 sm:$0xff]   ;;  %v2415_v24 = vld [vmem:[#allocation7 + $0xe0] ss:$28 sps:$4 sm:$0xff]   ;;  %v2408_v27 = vld [vmem:[#allocation7 + $0xb4] ss:$28 sps:$4 sm:$0xff]  }
  0x40   :  { %2070 = vmatmul.mubr.msk.bf16.vlgmr.msra.gmra.mrb[0].mxu1 %vm132_vm0, %v61_v6  ;;  %1674 = vmatpush1.bf16.msra.mxu0 %v2397_v13  ;;  %v2410_v22 = vld [vmem:[#allocation7 + $0xe4] ss:$28 sps:$4 sm:$0xff]   ;;  %v2416_v26 = vld [vmem:[#allocation7 + $0x11c] ss:$28 sps:$4 sm:$0xff]   ;;  %v2406_v28 = vld [vmem:[#allocation7 + $0xb0] ss:$28 sps:$4 sm:$0xff]  }
  0x41   :  { %178 = vmatpush1.bf16.msra.mxu1 %v2380_v8  ;;  %209 = vmatprep.mubr.bf16.mxu1 %v2835_v0  ;;  %v2421_v29 = vld [vmem:[#allocation7 + $0x118] ss:$28 sps:$4 sm:$0xff]   ;;  %v2414_v31 = vld [vmem:[#allocation7 + $0xec] ss:$28 sps:$4 sm:$0xff]   ;;  %v2420_v35 = vld [vmem:[#allocation7 + $0x124] ss:$28 sps:$4 sm:$0xff]  }
  0x42   :  { %179 = vmatprep.subr.bf16.mxu1 %v2385_v9  ;;  %1675 = vmatprep.subr.bf16.mxu0 %v2398_v14  ;;  %v2422_v30 = vld [vmem:[#allocation7 + $0x154] ss:$28 sps:$4 sm:$0xff]   ;;  %v2412_v33 = vld [vmem:[#allocation7 + $0xe8] ss:$28 sps:$4 sm:$0xff]   ;;  %v2418_v36 = vld [vmem:[#allocation7 + $0x120] ss:$28 sps:$4 sm:$0xff]  }
  0x43   :  { %v2427_v32 = vld [vmem:[#allocation7 + $0x150] ss:$28 sps:$4 sm:$0xff]   ;;  %v2433_v37 = vld [vmem:[#allocation7 + $0x188] ss:$28 sps:$4 sm:$0xff]   ;;  %v2426_v39 = vld [vmem:[#allocation7 + $0x15c] ss:$28 sps:$4 sm:$0xff]  }
  0x44   :  { %1676 = vmatpush1.bf16.msra.mxu0 %v2403_v16  ;;  %v2428_v34 = vld [vmem:[#allocation7 + $0x18c] ss:$28 sps:$4 sm:$0xff]   ;;  %v2434_v38 = vld [vmem:[#allocation7 + $0x1c4] ss:$28 sps:$4 sm:$0xff]   ;;  %v2424_v41 = vld [vmem:[#allocation7 + $0x158] ss:$28 sps:$4 sm:$0xff]  }
  0x45   :  { %180 = vmatpush1.bf16.msra.mxu1 %v2383_v12  ;;  %1677 = vmatprep.subr.bf16.mxu0 %v2404_v18  ;;  %v2439_v40 = vld [vmem:[#allocation7 + $0x1c0] ss:$28 sps:$4 sm:$0xff]   ;;  %v2432_v43 = vld [vmem:[#allocation7 + $0x194] ss:$28 sps:$4 sm:$0xff]   ;;  %v2438_v45 = vld [vmem:[#allocation7 + $0x1cc] ss:$28 sps:$4 sm:$0xff]   ;;  %v72_v12 = vlaneseq }
  0x46   :  { %1753 = vmatprep.subr.bf16.mxu1 %v2390_v15  ;;  %v2440_v42 = vld [vmem:[#allocation7 + $0x1fc] ss:$28 sps:$4 sm:$0xff]   ;;  %v2430_v44 = vld [vmem:[#allocation7 + $0x190] ss:$28 sps:$4 sm:$0xff]   ;;  %v2436_v49 = vld [vmem:[#allocation7 + $0x1c8] ss:$28 sps:$4 sm:$0xff]  }
  0x47   :  { %v2445_v46 = vld [vmem:[#allocation7 + $0x1f8] ss:$28 sps:$4 sm:$0xff]   ;;  %v2451_v48 = vld [vmem:[#allocation7 + $0x230] ss:$28 sps:$4 sm:$0xff]   ;;  %v2444_v51 = vld [vmem:[#allocation7 + $0x204] ss:$28 sps:$4 sm:$0xff]  }
  0x48   :  { %2071 = vmatmul.mubr.msk.bf16.vlgmr.msra.gmra.mrb[4].mxu1 %vm132_vm0, %v61_v6  ;;  %1678 = vmatpush1.bf16.msra.mxu0 %v2409_v21  ;;  %v2446_v47 = vld [vmem:[#allocation7 + $0x234] ss:$28 sps:$4 sm:$0xff]   ;;  %v2452_v50 = vld [vmem:[#allocation7 + $0x26c] ss:$28 sps:$4 sm:$0xff]   ;;  %v2442_v53 = vld [vmem:[#allocation7 + $0x200] ss:$28 sps:$4 sm:$0xff]  }
  0x49   :  { %1754 = vmatpush1.bf16.msra.mxu1 %v2388_v17  ;;  %1679 = vmatprep.subr.bf16.mxu0 %v2410_v22  ;;  %v2457_v52 = vld [vmem:[#allocation7 + $0x268] ss:$28 sps:$4 sm:$0xff]   ;;  %v2450_v55 = vld [vmem:[#allocation7 + $0x23c] ss:$28 sps:$4 sm:$0xff]   ;;  %v2456_v59 = vld [vmem:[#allocation7 + $0x274] ss:$28 sps:$4 sm:$0xff]  }
  0x4a   :  { %1755 = vmatprep.subr.bf16.mxu1 %v2396_v19  ;;  %v2458_v54 = vld [vmem:[#allocation7 + $0x2a4] ss:$28 sps:$4 sm:$0xff]   ;;  %v2448_v57 = vld [vmem:[#allocation7 + $0x238] ss:$28 sps:$4 sm:$0xff]   ;;  %v2454_v61 = vld [vmem:[#allocation7 + $0x270] ss:$28 sps:$4 sm:$0xff]  }
  0x4b   :  { %v2463_v56 = vld [vmem:[#allocation7 + $0x2a0] ss:$28 sps:$4 sm:$0xff]   ;;  %v2469_v60 = vld [vmem:[#allocation7 + $0x2d8] ss:$28 sps:$4 sm:$0xff]   ;;  %v2462_v62 = vld [vmem:[#allocation7 + $0x2ac] ss:$28 sps:$4 sm:$0xff]  }
  0x4c   :  { %1680 = vmatpush1.bf16.msra.mxu0 %v2415_v24  ;;  %v2464_v58 = vld [vmem:[#allocation7 + $0x2dc] ss:$28 sps:$4 sm:$0xff]   ;;  %v2460_v63 = vld [vmem:[#allocation7 + $0x2a8] ss:$28 sps:$4 sm:$0xff]   ;;  %v2470_v2 = vld [vmem:[#allocation7 + $0x314] ss:$28 sps:$4 sm:$0xff]  }
  0x4d   :  { %1756 = vmatpush1.bf16.msra.mxu1 %v2394_v20  ;;  %1681 = vmatprep.subr.bf16.mxu0 %v2416_v26  ;;  %v2468_v0 = vld [vmem:[#allocation7 + $0x2e4] ss:$28 sps:$4 sm:$0xff]   ;;  %v2474_v3 = vld [vmem:[#allocation7 + $0x31c] ss:$28 sps:$4 sm:$0xff]   ;;  %v2475_v5 = vld [vmem:[#allocation7 + $0x310] ss:$28 sps:$4 sm:$0xff]  }
  0x4e   :  { %1757 = vmatprep.subr.bf16.mxu1 %v2402_v23  ;;  %v2466_v1 = vld [vmem:[#allocation7 + $0x2e0] ss:$28 sps:$4 sm:$0xff]   ;;  %v2472_v4 = vld [vmem:[#allocation7 + $0x318] ss:$28 sps:$4 sm:$0xff]   ;;  %v2476_v6 = vld [vmem:[#allocation7 + $0x34c] ss:$28 sps:$4 sm:$0xff]  }
  0x4f   :  { %v2480_v7 = vld [vmem:[#allocation7 + $0x354] ss:$28 sps:$4 sm:$0xff]   ;;  %v2481_v9 = vld [vmem:[#allocation7 + $0x348] ss:$28 sps:$4 sm:$0xff]   ;;  %v2905_v13 = vshrl.u32 %v72_v12, 7 }
  0x50   :  { %1682 = vmatpush1.bf16.msra.mxu0 %v2421_v29  ;;  %v2478_v8 = vld [vmem:[#allocation7 + $0x350] ss:$28 sps:$4 sm:$0xff]   ;;  %v2484_v10 = vld [vmem:[#allocation7 + $0x384] ss:$28 sps:$4 sm:$0xff]   ;;  %v2911_v15 = vld [vmem:[%s2992_s2] sm:$0xf] }
  0x51   :  { %1758 = vmatpush1.bf16.msra.mxu1 %v2400_v25  ;;  %1683 = vmatprep.subr.bf16.mxu0 %v2422_v30  ;;  %v2487_v11 = vld [vmem:[#allocation7 + $0x38c] ss:$28 sps:$4 sm:$0xff]   ;;  %v74_v14 = vsub.s32 0, %v2905_v13  ;;  %v78_v16 = vsub.s32 1, %v2905_v13  ;;  %v86_v24 = vsub.s32 3, %v2905_v13 }
  0x52   :  { %1759 = vmatprep.subr.bf16.mxu1 %v2408_v27  ;;  %v2482_v29 = vld [vmem:[#allocation7 + $0x380] ss:$28 sps:$4 sm:$0xff]   ;;  %v2485_v30 = vld [vmem:[#allocation7 + $0x388] ss:$28 sps:$4 sm:$0xff]   ;;  %v2544_v12 = vld [vmem:[#allocation7 + $0x5b4] ss:$28 sps:$4 sm:$0xff]  }
  0x53   :  { %v75_v17 = vrot.slane %v2911_v15, %v74_v14  ;;  %v79_v18 = vrot.slane %v2911_v15, %v78_v16 }
  0x54   :  { %1684 = vmatpush1.bf16.msra.mxu0 %v2427_v32 }
  0x55   :  { %1760 = vmatpush1.bf16.msra.mxu1 %v2406_v28  ;;  %1685 = vmatprep.subr.bf16.mxu0 %v2428_v34  ;;  %v2493_v34 = vld [vmem:[#allocation7 + $0x3c4] ss:$28 sps:$4 sm:$0xff]  }
  0x56   :  { %1761 = vmatprep.subr.bf16.mxu1 %v2414_v31  ;;  %v87_v31 = vrot.slane %v2911_v15, %v86_v24 }
  0x58   :  { %1686 = vmatpush1.bf16.msra.mxu0 %v2433_v37  ;;  %v2488_v37 = vld [vmem:[#allocation7 + $0x3b8] ss:$28 sps:$4 sm:$0xff]  }
  0x59   :  { %1762 = vmatpush1.bf16.msra.mxu1 %v2412_v33  ;;  %1687 = vmatprep.subr.bf16.mxu0 %v2434_v38  ;;  %v2490_v33 = vld [vmem:[#allocation7 + $0x3bc] ss:$28 sps:$4 sm:$0xff]  }
  0x5a   :  { %1763 = vmatprep.subr.bf16.mxu1 %v2420_v35  ;;  %v2491_v38 = vld [vmem:[#allocation7 + $0x3c0] ss:$28 sps:$4 sm:$0xff]  }
  0x5c   :  { %1688 = vmatpush1.bf16.msra.mxu0 %v2439_v40 }
  0x5d   :  { %1764 = vmatpush1.bf16.msra.mxu1 %v2418_v36  ;;  %1689 = vmatprep.subr.bf16.mxu0 %v2440_v42  ;;  %v2499_v42 = vld [vmem:[#allocation7 + $0x3fc] ss:$28 sps:$4 sm:$0xff]  }
  0x5e   :  { %1765 = vmatprep.subr.bf16.mxu1 %v2426_v39 }
  0x60   :  { %1690 = vmatpush1.bf16.msra.mxu0 %v2445_v46  ;;  %v2497_v46 = vld [vmem:[#allocation7 + $0x3f8] ss:$28 sps:$4 sm:$0xff]  }
  0x61   :  { %1766 = vmatpush1.bf16.msra.mxu1 %v2424_v41  ;;  %1691 = vmatprep.subr.bf16.mxu0 %v2446_v47  ;;  %v2496_v41 = vld [vmem:[#allocation7 + $0x3f4] ss:$28 sps:$4 sm:$0xff]  }
  0x62   :  { %1767 = vmatprep.subr.bf16.mxu1 %v2432_v43 }
  0x64   :  { %1692 = vmatpush1.bf16.msra.mxu0 %v2451_v48  ;;  %v2502_v48 = vld [vmem:[#allocation7 + $0x42c] ss:$28 sps:$4 sm:$0xff]  }
  0x65   :  { %1768 = vmatpush1.bf16.msra.mxu1 %v2430_v44  ;;  %1693 = vmatprep.subr.bf16.mxu0 %v2452_v50  ;;  %v2500_v50 = vld [vmem:[#allocation7 + $0x428] ss:$28 sps:$4 sm:$0xff]  }
  0x66   :  { %1769 = vmatprep.subr.bf16.mxu1 %v2438_v45  ;;  %v2494_v45 = vld [vmem:[#allocation7 + $0x3f0] ss:$28 sps:$4 sm:$0xff]  }
  0x68   :  { %1694 = vmatpush1.bf16.msra.mxu0 %v2457_v52  ;;  %v2508_v52 = vld [vmem:[#allocation7 + $0x464] ss:$28 sps:$4 sm:$0xff]  }
  0x69   :  { %1770 = vmatpush1.bf16.msra.mxu1 %v2436_v49  ;;  %1695 = vmatprep.subr.bf16.mxu0 %v2458_v54  ;;  %v2505_v49 = vld [vmem:[#allocation7 + $0x434] ss:$28 sps:$4 sm:$0xff]   ;;  %v2506_v54 = vld [vmem:[#allocation7 + $0x460] ss:$28 sps:$4 sm:$0xff]  }
  0x6a   :  { %1771 = vmatprep.subr.bf16.mxu1 %v2444_v51  ;;  %v2503_v51 = vld [vmem:[#allocation7 + $0x430] ss:$28 sps:$4 sm:$0xff]  }
  0x6c   :  { %1696 = vmatpush1.bf16.msra.mxu0 %v2463_v56  ;;  %v2514_v56 = vld [vmem:[#allocation7 + $0x49c] ss:$28 sps:$4 sm:$0xff]  }
  0x6d   :  { %1772 = vmatpush1.bf16.msra.mxu1 %v2442_v53  ;;  %1697 = vmatprep.subr.bf16.mxu0 %v2464_v58  ;;  %v2511_v53 = vld [vmem:[#allocation7 + $0x46c] ss:$28 sps:$4 sm:$0xff]   ;;  %v2512_v58 = vld [vmem:[#allocation7 + $0x498] ss:$28 sps:$4 sm:$0xff]  }
  0x6e   :  { %1773 = vmatprep.subr.bf16.mxu1 %v2450_v55  ;;  %v2509_v55 = vld [vmem:[#allocation7 + $0x468] ss:$28 sps:$4 sm:$0xff]  }
  0x70   :  { %1698 = vmatpush1.bf16.msra.mxu0 %v2469_v60  ;;  %v2520_v60 = vld [vmem:[#allocation7 + $0x4d4] ss:$28 sps:$4 sm:$0xff]  }
  0x71   :  { %1774 = vmatpush1.bf16.msra.mxu1 %v2448_v57  ;;  %1699 = vmatprep.subr.bf16.mxu0 %v2470_v2  ;;  %v2517_v57 = vld [vmem:[#allocation7 + $0x4a4] ss:$28 sps:$4 sm:$0xff]  }
  0x72   :  { %1775 = vmatprep.subr.bf16.mxu1 %v2456_v59  ;;  %v2515_v59 = vld [vmem:[#allocation7 + $0x4a0] ss:$28 sps:$4 sm:$0xff]   ;;  %v2524_v2 = vld [vmem:[#allocation7 + $0x508] ss:$28 sps:$4 sm:$0xff]  }
  0x74   :  { %1700 = vmatpush1.bf16.msra.mxu0 %v2475_v5  ;;  %v2535_v5 = vld [vmem:[#allocation7 + $0x54c] ss:$28 sps:$4 sm:$0xff]  }
  0x75   :  { %1776 = vmatpush1.bf16.msra.mxu1 %v2454_v61  ;;  %1701 = vmatprep.subr.bf16.mxu0 %v2476_v6  ;;  %v2523_v61 = vld [vmem:[#allocation7 + $0x4dc] ss:$28 sps:$4 sm:$0xff]  }
  0x76   :  { %1777 = vmatprep.subr.bf16.mxu1 %v2462_v62  ;;  %v2518_v62 = vld [vmem:[#allocation7 + $0x4d0] ss:$28 sps:$4 sm:$0xff]   ;;  %v2530_v6 = vld [vmem:[#allocation7 + $0x540] ss:$28 sps:$4 sm:$0xff]  }
  0x78   :  { %1702 = vmatpush1.bf16.msra.mxu0 %v2481_v9  ;;  %v2541_v9 = vld [vmem:[#allocation7 + $0x584] ss:$28 sps:$4 sm:$0xff]  }
  0x79   :  { %1778 = vmatpush1.bf16.msra.mxu1 %v2460_v63  ;;  %1712 = vmatprep.subr.bf16.mxu0 %v2484_v10  ;;  %v2521_v63 = vld [vmem:[#allocation7 + $0x4d8] ss:$28 sps:$4 sm:$0xff]  }
  0x7a   :  { %1779 = vmatprep.subr.bf16.mxu1 %v2468_v0  ;;  %v2526_v0 = vld [vmem:[#allocation7 + $0x50c] ss:$28 sps:$4 sm:$0xff]   ;;  %v2536_v10 = vld [vmem:[#allocation7 + $0x578] ss:$28 sps:$4 sm:$0xff]  }
  0x7d   :  { %1780 = vmatpush1.bf16.msra.mxu1 %v2466_v1  ;;  %v2529_v1 = vld [vmem:[#allocation7 + $0x514] ss:$28 sps:$4 sm:$0xff]  }
  0x7e   :  { %1781 = vmatprep.subr.bf16.mxu1 %v2474_v3  ;;  %v2527_v3 = vld [vmem:[#allocation7 + $0x510] ss:$28 sps:$4 sm:$0xff]  }
  0x81   :  { %1782 = vmatpush1.bf16.msra.mxu1 %v2472_v4  ;;  %v2532_v4 = vld [vmem:[#allocation7 + $0x544] ss:$28 sps:$4 sm:$0xff]  }
  0x82   :  { %1783 = vmatprep.subr.bf16.mxu1 %v2480_v7  ;;  %v2533_v7 = vld [vmem:[#allocation7 + $0x548] ss:$28 sps:$4 sm:$0xff]  }
  0x85   :  { %1784 = vmatpush1.bf16.msra.mxu1 %v2478_v8  ;;  %v2538_v8 = vld [vmem:[#allocation7 + $0x57c] ss:$28 sps:$4 sm:$0xff]  }
  0x86   :  { %1794 = vmatprep.subr.bf16.mxu1 %v2487_v11  ;;  %v2539_v11 = vld [vmem:[#allocation7 + $0x580] ss:$28 sps:$4 sm:$0xff]  }
 0x113   :  { %v170_v19 = vpop.f32.mrb[0].mxu1 }
 0x114   :  { %v171_v20 = vadd.f32 %v170_v19, %v75_v17  ;;  %v172_v21 = vpop.f32.mrb[1].mxu1  ;;  %v2547_v17 = vld [vmem:[#allocation7 + $0x5bc] ss:$28 sps:$4 sm:$0xff]  }
 0x115   :  { %v173_v22 = vadd.f32 %v172_v21, %v79_v18  ;;  %v174_v23 = vpop.f32.mrb[2].mxu1  ;;  %v2542_v18 = vld [vmem:[#allocation7 + $0x5b0] ss:$28 sps:$4 sm:$0xff]   ;;  %v2545_v19 = vld [vmem:[#allocation7 + $0x5b8] ss:$28 sps:$4 sm:$0xff]  }
 0x116   :  { %v218_v25 = vmax.f32 %v171_v20, 0.0  ;;  %v175_v26 = vpop.f32.mrb[3].mxu1  ;;  %v2550_v20 = vld [vmem:[#allocation7 + $0x5ec] ss:$28 sps:$4 sm:$0xff]   ;;  %v2553_v21 = vld [vmem:[#allocation7 + $0x5f4] ss:$28 sps:$4 sm:$0xff]  }
 0x117   :  { %v219_v27 = vmax.f32 %v173_v22, 0.0  ;;  %v2548_v22 = vld [vmem:[#allocation7 + $0x5e8] ss:$28 sps:$4 sm:$0xff]   ;;  %v2551_v23 = vld [vmem:[#allocation7 + $0x5f0] ss:$28 sps:$4 sm:$0xff]  }
 0x118   :  { %v2926_v32 = vpack.c.bf16 %v218_v25, %v218_v25  ;;  %v2556_v25 = vld [vmem:[#allocation7 + $0x624] ss:$28 sps:$4 sm:$0xff]   ;;  %v2559_v26 = vld [vmem:[#allocation7 + $0x62c] ss:$28 sps:$4 sm:$0xff]  }
 0x119   :  { %v2921_v28 = vpack.c.bf16 %v219_v27, %v219_v27  ;;  %v82_v27 = vsub.s32 2, %v2905_v13 }
 0x11b   :  { %1703 = vmatprep.mubr.bf16.mxu0 %v2921_v28  ;;  %1785 = vmatprep.mubr.bf16.mxu1 %v2921_v28  ;;  %v2930_v35 = vpop.f32.mrb[4].mxu1 }
 0x11c   :  { %1704 = vmatmul.mubr.bf16.vlgmr.msra.gmra.mrb[0].mxu0 %v2926_v32  ;;  %1786 = vmatmul.mubr.bf16.vlgmr.msra.gmra.mrb[8].mxu1 %v2926_v32  ;;  %v213_v36 = vpop.f32.mrb[5].mxu1 }
 0x11d   :  { %1713 = vmatpush1.bf16.msra.mxu0 %v2482_v29  ;;  %1795 = vmatpush1.bf16.msra.mxu1 %v2485_v30  ;;  %v214_v39 = vadd.f32 %v213_v36, %v87_v31  ;;  %v215_v40 = vpop.f32.mrb[6].mxu1  ;;  %v2554_v29 = vld [vmem:[#allocation7 + $0x620] ss:$28 sps:$4 sm:$0xff]   ;;  %v2557_v30 = vld [vmem:[#allocation7 + $0x628] ss:$28 sps:$4 sm:$0xff]  }
 0x11e   :  { %1714 = vmatprep.subr.bf16.mxu0 %v2490_v33  ;;  %1796 = vmatprep.subr.bf16.mxu1 %v2493_v34  ;;  %v216_v43 = vpop.f32.mrb[7].mxu1  ;;  %v2562_v31 = vld [vmem:[#allocation7 + $0x65c] ss:$28 sps:$4 sm:$0xff]   ;;  %v2565_v33 = vld [vmem:[#allocation7 + $0x664] ss:$28 sps:$4 sm:$0xff]   ;;  %v83_v34 = vrot.slane %v2911_v15, %v82_v27 }
 0x11f   :  { %v221_v44 = vmax.f32 %v214_v39, 0.0  ;;  %v2560_v36 = vld [vmem:[#allocation7 + $0x658] ss:$28 sps:$4 sm:$0xff]   ;;  %v2574_v43 = vld [vmem:[#allocation7 + $0x6cc] ss:$28 sps:$4 sm:$0xff]  }
 0x120   :  { %v2571_v39 = vld [vmem:[#allocation7 + $0x69c] ss:$28 sps:$4 sm:$0xff]   ;;  %v212_v40 = vadd.f32 %v2930_v35, %v83_v34  ;;  %v2572_v15 = vld [vmem:[#allocation7 + $0x6c8] ss:$28 sps:$4 sm:$0xff]   ;;  %v2578_v35 = vld [vmem:[#allocation7 + $0x10] ss:$28 sps:$4 sm:$0xff]  }
 0x121   :  { %1715 = vmatpush1.bf16.msra.mxu0 %v2488_v37  ;;  %1797 = vmatpush1.bf16.msra.mxu1 %v2491_v38  ;;  %v2934_v47 = vpack.c.bf16 %v221_v44, %v221_v44  ;;  %v2563_v37 = vld [vmem:[#allocation7 + $0x660] ss:$28 sps:$4 sm:$0xff]   ;;  %v2568_v38 = vld [vmem:[#allocation7 + $0x694] ss:$28 sps:$4 sm:$0xff]   ;;  %v2632_v34 = vld [vmem:[#allocation7 + $0x408] ss:$28 sps:$4 sm:$0xff]  }
 0x122   :  { %1716 = vmatprep.subr.bf16.mxu0 %v2496_v41  ;;  %1798 = vmatprep.subr.bf16.mxu1 %v2499_v42  ;;  %v2566_v41 = vld [vmem:[#allocation7 + $0x690] ss:$28 sps:$4 sm:$0xff]   ;;  %v2569_v42 = vld [vmem:[#allocation7 + $0x698] ss:$28 sps:$4 sm:$0xff]  }
 0x123   :  { %1744 = vmatprep.mubr.bf16.mxu0 %v2934_v47  ;;  %1826 = vmatprep.mubr.bf16.mxu1 %v2934_v47  ;;  %v2577_v44 = vld [vmem:[#allocation7 + $0x6d4] ss:$28 sps:$4 sm:$0xff]  }
 0x125   :  { %1717 = vmatpush1.bf16.msra.mxu0 %v2494_v45  ;;  %1799 = vmatpush1.bf16.msra.mxu1 %v2497_v46  ;;  %v220_v45 = vmax.f32 %v212_v40, 0.0  ;;  %v2575_v46 = vld [vmem:[#allocation7 + $0x6d0] ss:$28 sps:$4 sm:$0xff]  }
 0x126   :  { %1718 = vmatprep.subr.bf16.mxu0 %v2502_v48  ;;  %1800 = vmatprep.subr.bf16.mxu1 %v2505_v49  ;;  %v2580_v48 = vld [vmem:[#allocation7 + $0x14] ss:$28 sps:$4 sm:$0xff]  }
 0x127   :  { %v2581_v49 = vld [vmem:[#allocation7 + $0x1d8] ss:$28 sps:$4 sm:$0xff]  }
 0x128   :  { %v2640_v40 = vld [vmem:[#allocation7 + $0x2b4] ss:$28 sps:$4 sm:$0xff]  }
 0x129   :  { %1719 = vmatpush1.bf16.msra.mxu0 %v2500_v50  ;;  %1801 = vmatpush1.bf16.msra.mxu1 %v2503_v51  ;;  %v2943_v50 = vpack.c.bf16 %v220_v45, %v220_v45  ;;  %v2582_v51 = vld [vmem:[#allocation7 + $0x18] ss:$28 sps:$4 sm:$0xff]   ;;  %v2646_v45 = vld [vmem:[#allocation7 + $0x670] ss:$28 sps:$4 sm:$0xff]  }
 0x12a   :  { %1720 = vmatprep.subr.bf16.mxu0 %v2508_v52  ;;  %1802 = vmatprep.subr.bf16.mxu1 %v2511_v53  ;;  %v2585_v52 = vld [vmem:[#allocation7 + $0x4c] ss:$28 sps:$4 sm:$0xff]  }
 0x12b   :  { %v2586_v53 = vld [vmem:[#allocation7 + $0x210] ss:$28 sps:$4 sm:$0xff]  }
 0x12d   :  { %1721 = vmatpush1.bf16.msra.mxu0 %v2506_v54  ;;  %1803 = vmatpush1.bf16.msra.mxu1 %v2509_v55  ;;  %v2583_v54 = vld [vmem:[#allocation7 + $0x48] ss:$28 sps:$4 sm:$0xff]   ;;  %v2587_v55 = vld [vmem:[#allocation7 + $0x50] ss:$28 sps:$4 sm:$0xff]  }
 0x12e   :  { %1722 = vmatprep.subr.bf16.mxu0 %v2514_v56  ;;  %1804 = vmatprep.subr.bf16.mxu1 %v2517_v57  ;;  %v2590_v56 = vld [vmem:[#allocation7 + $0x84] ss:$28 sps:$4 sm:$0xff]  }
 0x12f   :  { %v2591_v57 = vld [vmem:[#allocation7 + $0x248] ss:$28 sps:$4 sm:$0xff]  }
 0x131   :  { %1723 = vmatpush1.bf16.msra.mxu0 %v2512_v58  ;;  %1805 = vmatpush1.bf16.msra.mxu1 %v2515_v59  ;;  %v2588_v58 = vld [vmem:[#allocation7 + $0x80] ss:$28 sps:$4 sm:$0xff]   ;;  %v2592_v59 = vld [vmem:[#allocation7 + $0x88] ss:$28 sps:$4 sm:$0xff]  }
 0x132   :  { %1724 = vmatprep.subr.bf16.mxu0 %v2520_v60  ;;  %1806 = vmatprep.subr.bf16.mxu1 %v2523_v61  ;;  %v2595_v60 = vld [vmem:[#allocation7 + $0xbc] ss:$28 sps:$4 sm:$0xff]  }
 0x133   :  { %v2596_v61 = vld [vmem:[#allocation7 + $0x280] ss:$28 sps:$4 sm:$0xff]  }
 0x135   :  { %1725 = vmatpush1.bf16.msra.mxu0 %v2518_v62  ;;  %1807 = vmatpush1.bf16.msra.mxu1 %v2521_v63  ;;  %v2593_v62 = vld [vmem:[#allocation7 + $0xb8] ss:$28 sps:$4 sm:$0xff]   ;;  %v2597_v63 = vld [vmem:[#allocation7 + $0xc0] ss:$28 sps:$4 sm:$0xff]  }
 0x136   :  { %1726 = vmatprep.subr.bf16.mxu0 %v2526_v0  ;;  %1808 = vmatprep.subr.bf16.mxu1 %v2529_v1  ;;  %v2600_v0 = vld [vmem:[#allocation7 + $0xf4] ss:$28 sps:$4 sm:$0xff]  }
 0x137   :  { %v2598_v1 = vld [vmem:[#allocation7 + $0xf0] ss:$28 sps:$4 sm:$0xff]  }
 0x139   :  { %1727 = vmatpush1.bf16.msra.mxu0 %v2524_v2  ;;  %1809 = vmatpush1.bf16.msra.mxu1 %v2527_v3  ;;  %v2602_v2 = vld [vmem:[#allocation7 + $0xf8] ss:$28 sps:$4 sm:$0xff]   ;;  %v2605_v3 = vld [vmem:[#allocation7 + $0x12c] ss:$28 sps:$4 sm:$0xff]  }
 0x13a   :  { %1728 = vmatprep.subr.bf16.mxu0 %v2532_v4  ;;  %1810 = vmatprep.subr.bf16.mxu1 %v2535_v5  ;;  %v2606_v4 = vld [vmem:[#allocation7 + $0x2f0] ss:$28 sps:$4 sm:$0xff]   ;;  %v2603_v5 = vld [vmem:[#allocation7 + $0x128] ss:$28 sps:$4 sm:$0xff]  }
 0x13d   :  { %1729 = vmatpush1.bf16.msra.mxu0 %v2530_v6  ;;  %1811 = vmatpush1.bf16.msra.mxu1 %v2533_v7  ;;  %v2607_v6 = vld [vmem:[#allocation7 + $0x130] ss:$28 sps:$4 sm:$0xff]   ;;  %v2610_v7 = vld [vmem:[#allocation7 + $0x164] ss:$28 sps:$4 sm:$0xff]  }
 0x13e   :  { %1730 = vmatprep.subr.bf16.mxu0 %v2538_v8  ;;  %1812 = vmatprep.subr.bf16.mxu1 %v2541_v9  ;;  %v2611_v8 = vld [vmem:[#allocation7 + $0x328] ss:$28 sps:$4 sm:$0xff]   ;;  %v2608_v9 = vld [vmem:[#allocation7 + $0x160] ss:$28 sps:$4 sm:$0xff]  }
 0x141   :  { %1731 = vmatpush1.bf16.msra.mxu0 %v2536_v10  ;;  %1813 = vmatpush1.bf16.msra.mxu1 %v2539_v11  ;;  %v2612_v10 = vld [vmem:[#allocation7 + $0x168] ss:$28 sps:$4 sm:$0xff]   ;;  %v2615_v11 = vld [vmem:[#allocation7 + $0x19c] ss:$28 sps:$4 sm:$0xff]  }
 0x142   :  { %1732 = vmatprep.subr.bf16.mxu0 %v2544_v12  ;;  %1814 = vmatprep.subr.bf16.mxu1 %v2547_v17  ;;  %v2616_v12 = vld [vmem:[#allocation7 + $0x360] ss:$28 sps:$4 sm:$0xff]   ;;  %v2613_v17 = vld [vmem:[#allocation7 + $0x198] ss:$28 sps:$4 sm:$0xff]  }
 0x145   :  { %1733 = vmatpush1.bf16.msra.mxu0 %v2542_v18  ;;  %1815 = vmatpush1.bf16.msra.mxu1 %v2545_v19  ;;  %v2617_v18 = vld [vmem:[#allocation7 + $0x1a0] ss:$28 sps:$4 sm:$0xff]   ;;  %v2620_v19 = vld [vmem:[#allocation7 + $0x1d4] ss:$28 sps:$4 sm:$0xff]  }
 0x146   :  { %1734 = vmatprep.subr.bf16.mxu0 %v2550_v20  ;;  %1816 = vmatprep.subr.bf16.mxu1 %v2553_v21  ;;  %v2621_v20 = vld [vmem:[#allocation7 + $0x558] ss:$28 sps:$4 sm:$0xff]   ;;  %v2618_v21 = vld [vmem:[#allocation7 + $0x1d0] ss:$28 sps:$4 sm:$0xff]  }
 0x149   :  { %1735 = vmatpush1.bf16.msra.mxu0 %v2548_v22  ;;  %1817 = vmatpush1.bf16.msra.mxu1 %v2551_v23  ;;  %v2622_v22 = vld [vmem:[#allocation7 + $0x398] ss:$28 sps:$4 sm:$0xff]   ;;  %v2625_v23 = vld [vmem:[#allocation7 + $0x20c] ss:$28 sps:$4 sm:$0xff]  }
 0x14a   :  { %1736 = vmatprep.subr.bf16.mxu0 %v2556_v25  ;;  %1818 = vmatprep.subr.bf16.mxu1 %v2559_v26  ;;  %v2626_v25 = vld [vmem:[#allocation7 + $0x590] ss:$28 sps:$4 sm:$0xff]   ;;  %v2623_v26 = vld [vmem:[#allocation7 + $0x208] ss:$28 sps:$4 sm:$0xff]  }
 0x14d   :  { %1737 = vmatpush1.bf16.msra.mxu0 %v2554_v29  ;;  %1819 = vmatpush1.bf16.msra.mxu1 %v2557_v30  ;;  %v2627_v29 = vld [vmem:[#allocation7 + $0x3d0] ss:$28 sps:$4 sm:$0xff]   ;;  %v2630_v30 = vld [vmem:[#allocation7 + $0x244] ss:$28 sps:$4 sm:$0xff]  }
 0x14e   :  { %1738 = vmatprep.subr.bf16.mxu0 %v2562_v31  ;;  %1820 = vmatprep.subr.bf16.mxu1 %v2565_v33  ;;  %v2631_v31 = vld [vmem:[#allocation7 + $0x5c8] ss:$28 sps:$4 sm:$0xff]   ;;  %v2628_v33 = vld [vmem:[#allocation7 + $0x240] ss:$28 sps:$4 sm:$0xff]  }
 0x151   :  { %1739 = vmatpush1.bf16.msra.mxu0 %v2560_v36  ;;  %1821 = vmatpush1.bf16.msra.mxu1 %v2563_v37  ;;  %v2635_v36 = vld [vmem:[#allocation7 + $0x27c] ss:$28 sps:$4 sm:$0xff]  }
 0x152   :  { %1740 = vmatprep.subr.bf16.mxu0 %v2568_v38  ;;  %1822 = vmatprep.subr.bf16.mxu1 %v2571_v39  ;;  %v2636_v37 = vld [vmem:[#allocation7 + $0x600] ss:$28 sps:$4 sm:$0xff]   ;;  %v2633_v38 = vld [vmem:[#allocation7 + $0x278] ss:$28 sps:$4 sm:$0xff]  }
 0x153   :  { %v2637_v39 = vld [vmem:[#allocation7 + $0x440] ss:$28 sps:$4 sm:$0xff]  }
 0x155   :  { %1741 = vmatpush1.bf16.msra.mxu0 %v2566_v41  ;;  %1823 = vmatpush1.bf16.msra.mxu1 %v2569_v42  ;;  %v2641_v41 = vld [vmem:[#allocation7 + $0x638] ss:$28 sps:$4 sm:$0xff]   ;;  %v2638_v42 = vld [vmem:[#allocation7 + $0x2b0] ss:$28 sps:$4 sm:$0xff]  }
 0x156   :  { %1742 = vmatprep.subr.bf16.mxu0 %v2574_v43  ;;  %1824 = vmatprep.subr.bf16.mxu1 %v2577_v44  ;;  %v2642_v43 = vld [vmem:[#allocation7 + $0x478] ss:$28 sps:$4 sm:$0xff]   ;;  %v2645_v44 = vld [vmem:[#allocation7 + $0x2ec] ss:$28 sps:$4 sm:$0xff]  }
 0x159   :  { %1743 = vmatpush1.bf16.msra.mxu0 %v2572_v15  ;;  %1825 = vmatpush1.bf16.msra.mxu1 %v2575_v46  ;;  %v2643_v15 = vld [vmem:[#allocation7 + $0x2e8] ss:$28 sps:$4 sm:$0xff]   ;;  %v2647_v46 = vld [vmem:[#allocation7 + $0x4b0] ss:$28 sps:$4 sm:$0xff]  }
 0x15a   :  { %1835 = vmatprep.subr.bf16.mxu0 %v2580_v48  ;;  %2303 = vmatprep.subr.bf16.mxu1 %v2581_v49  ;;  %v2650_v48 = vld [vmem:[#allocation7 + $0x324] ss:$28 sps:$4 sm:$0xff]  }
 0x15b   :  { %v2651_v49 = vld [vmem:[#allocation7 + $0x6a8] ss:$28 sps:$4 sm:$0xff]  }
 0x15c   :  { %1745 = vmatmul.mubr.bf16.vlgmr.msra.gmra.mrb[0].mxu0 %v2943_v50  ;;  %1827 = vmatmul.mubr.bf16.vlgmr.msra.gmra.mrb[8].mxu1 %v2943_v50 }
 0x15d   :  { %1836 = vmatpush1.bf16.msra.mxu0 %v2578_v35  ;;  %1867 = vmatprep.mubr.bf16.mxu0 %v2921_v28  ;;  %v2648_v35 = vld [vmem:[#allocation7 + $0x320] ss:$28 sps:$4 sm:$0xff]  }
 0x15e   :  { %2304 = vmatpush3.bf16.msra.mxu1 %v2582_v51  ;;  %1949 = vmatprep.mubr.bf16.mxu1 %v2921_v28  ;;  %v2601_v28 = vld [vmem:[#allocation7 + $0x2b8] ss:$28 sps:$4 sm:$0xff]   ;;  %v2652_v51 = vld [vmem:[#allocation7 + $0x4e8] ss:$28 sps:$4 sm:$0xff]  }
 0x15f   :  { %1837 = vmatprep.subr.bf16.mxu0 %v2585_v52  ;;  %2305 = vmatprep.subr.bf16.mxu1 %v2586_v53  ;;  %v2655_v52 = vld [vmem:[#allocation7 + $0x35c] ss:$28 sps:$4 sm:$0xff]  }
 0x160   :  { %v2656_v53 = vld [vmem:[#allocation7 + $0x6e0] ss:$28 sps:$4 sm:$0xff]  }
 0x161   :  { %1838 = vmatpush1.bf16.msra.mxu0 %v2583_v54  ;;  %v2653_v54 = vld [vmem:[#allocation7 + $0x358] ss:$28 sps:$4 sm:$0xff]  }
 0x162   :  { %2306 = vmatpush3.bf16.msra.mxu1 %v2587_v55  ;;  %1839 = vmatprep.subr.bf16.mxu0 %v2590_v56  ;;  %v2657_v55 = vld [vmem:[#allocation7 + $0x520] ss:$28 sps:$4 sm:$0xff]   ;;  %v2660_v56 = vld [vmem:[#allocation7 + $0x394] ss:$28 sps:$4 sm:$0xff]  }
 0x163   :  { %2307 = vmatprep.subr.bf16.mxu1 %v2591_v57  ;;  %v2658_v57 = vld [vmem:[#allocation7 + $0x390] ss:$28 sps:$4 sm:$0xff]  }
 0x165   :  { %1840 = vmatpush1.bf16.msra.mxu0 %v2588_v58  ;;  %v2663_v58 = vld [vmem:[#allocation7 + $0x3cc] ss:$28 sps:$4 sm:$0xff]  }
 0x166   :  { %2308 = vmatpush3.bf16.msra.mxu1 %v2592_v59  ;;  %1841 = vmatprep.subr.bf16.mxu0 %v2595_v60  ;;  %v2661_v59 = vld [vmem:[#allocation7 + $0x3c8] ss:$28 sps:$4 sm:$0xff]  }
 0x167   :  { %2309 = vmatprep.subr.bf16.mxu1 %v2596_v61  ;;  %v2666_v60 = vld [vmem:[#allocation7 + $0x404] ss:$28 sps:$4 sm:$0xff]  }
 0x168   :  { %v2664_v61 = vld [vmem:[#allocation7 + $0x400] ss:$28 sps:$4 sm:$0xff]  }
 0x169   :  { %1842 = vmatpush1.bf16.msra.mxu0 %v2593_v62  ;;  %v2669_v62 = vld [vmem:[#allocation7 + $0x43c] ss:$28 sps:$4 sm:$0xff]  }
 0x16a   :  { %2310 = vmatpush3.bf16.msra.mxu1 %v2597_v63  ;;  %1843 = vmatprep.subr.bf16.mxu0 %v2600_v0  ;;  %v2667_v63 = vld [vmem:[#allocation7 + $0x438] ss:$28 sps:$4 sm:$0xff]  }
 0x16b   :  { %2311 = vmatprep.subr.bf16.mxu1 %v2601_v28  ;;  %v2672_v0 = vld [vmem:[#allocation7 + $0x474] ss:$28 sps:$4 sm:$0xff]  }
 0x16c   :  { %v2670_v28 = vld [vmem:[#allocation7 + $0x470] ss:$28 sps:$4 sm:$0xff]  }
 0x16d   :  { %1844 = vmatpush1.bf16.msra.mxu0 %v2598_v1  ;;  %v2673_v1 = vld [vmem:[#allocation7 + $0x4a8] ss:$28 sps:$4 sm:$0xff]  }
 0x16e   :  { %2312 = vmatpush3.bf16.msra.mxu1 %v2602_v2  ;;  %1845 = vmatprep.subr.bf16.mxu0 %v2605_v3  ;;  %v2678_v2 = vld [vmem:[#allocation7 + $0x4e4] ss:$28 sps:$4 sm:$0xff]   ;;  %v2681_v3 = vld [vmem:[#allocation7 + $0x51c] ss:$28 sps:$4 sm:$0xff]  }
 0x16f   :  { %2313 = vmatprep.subr.bf16.mxu1 %v2606_v4  ;;  %v2679_v4 = vld [vmem:[#allocation7 + $0x518] ss:$28 sps:$4 sm:$0xff]  }
 0x171   :  { %1846 = vmatpush1.bf16.msra.mxu0 %v2603_v5  ;;  %v2684_v5 = vld [vmem:[#allocation7 + $0x554] ss:$28 sps:$4 sm:$0xff]  }
 0x172   :  { %2314 = vmatpush3.bf16.msra.mxu1 %v2607_v6  ;;  %1847 = vmatprep.subr.bf16.mxu0 %v2610_v7  ;;  %v2682_v6 = vld [vmem:[#allocation7 + $0x550] ss:$28 sps:$4 sm:$0xff]  }
 0x173   :  { %2315 = vmatprep.subr.bf16.mxu1 %v2611_v8  ;;  %v2687_v7 = vld [vmem:[#allocation7 + $0x58c] ss:$28 sps:$4 sm:$0xff]  }
 0x174   :  { %v2685_v8 = vld [vmem:[#allocation7 + $0x588] ss:$28 sps:$4 sm:$0xff]  }
 0x175   :  { %1848 = vmatpush1.bf16.msra.mxu0 %v2608_v9  ;;  %v2690_v9 = vld [vmem:[#allocation7 + $0x5c4] ss:$28 sps:$4 sm:$0xff]  }
 0x176   :  { %2316 = vmatpush3.bf16.msra.mxu1 %v2612_v10  ;;  %1849 = vmatprep.subr.bf16.mxu0 %v2615_v11  ;;  %v2688_v10 = vld [vmem:[#allocation7 + $0x5c0] ss:$28 sps:$4 sm:$0xff]  }
 0x177   :  { %2317 = vmatprep.subr.bf16.mxu1 %v2616_v12  ;;  %v2693_v11 = vld [vmem:[#allocation7 + $0x5fc] ss:$28 sps:$4 sm:$0xff]  }
 0x178   :  { %v2691_v12 = vld [vmem:[#allocation7 + $0x5f8] ss:$28 sps:$4 sm:$0xff]  }
 0x179   :  { %1850 = vmatpush1.bf16.msra.mxu0 %v2613_v17  ;;  %v2696_v17 = vld [vmem:[#allocation7 + $0x634] ss:$28 sps:$4 sm:$0xff]  }
 0x17a   :  { %2318 = vmatpush3.bf16.msra.mxu1 %v2617_v18  ;;  %1851 = vmatprep.subr.bf16.mxu0 %v2620_v19  ;;  %v2694_v18 = vld [vmem:[#allocation7 + $0x630] ss:$28 sps:$4 sm:$0xff]  }
 0x17b   :  { %2325 = vmatprep.subr.bf16.mxu1 %v2621_v20  ;;  %v2699_v19 = vld [vmem:[#allocation7 + $0x66c] ss:$28 sps:$4 sm:$0xff]  }
 0x17c   :  { %v2697_v20 = vld [vmem:[#allocation7 + $0x668] ss:$28 sps:$4 sm:$0xff]  }
 0x17d   :  { %1950 = vmatmul.mubr.bf16.vlgmr.msra.gmra.mrb[12].mxu1 %v2926_v32  ;;  %1852 = vmatpush1.bf16.msra.mxu0 %v2618_v21  ;;  %v2702_v21 = vld [vmem:[#allocation7 + $0x6a4] ss:$28 sps:$4 sm:$0xff]  }
 0x17e   :  { %2326 = vmatpush3.bf16.msra.mxu1 %v2622_v22  ;;  %1989 = vmatprep.mubr.bf16.mxu1 %v2934_v47  ;;  %v2700_v22 = vld [vmem:[#allocation7 + $0x6a0] ss:$28 sps:$4 sm:$0xff]  }
 0x17f   :  { %1853 = vmatprep.subr.bf16.mxu0 %v2625_v23  ;;  %2327 = vmatprep.subr.bf16.mxu1 %v2626_v25  ;;  %v2705_v23 = vld [vmem:[#allocation7 + $0x6dc] ss:$28 sps:$4 sm:$0xff]  }
 0x180   :  { %v2703_v25 = vld [vmem:[#allocation7 + $0x6d8] ss:$28 sps:$4 sm:$0xff]  }
 0x181   :  { %1854 = vmatpush1.bf16.msra.mxu0 %v2623_v26  ;;  %v2958_v26 = vld [vmem:[%s2994_s4] sm:$0xff]  ;;  %s2836_s4 = smov [#allocation8]  }
 0x182   :  { %2328 = vmatpush3.bf16.msra.mxu1 %v2627_v29  ;;  %1855 = vmatprep.subr.bf16.mxu0 %v2630_v30  ;;  %v487_v29 = vrot.slane %v2958_v26, %v74_v14  ;;  %v495_v30 = vrot.slane %v2958_v26, %v82_v27  ;;  %s2052_s8 = sshll.u32 %s2836_s4, 4  ;;  %s2053_s8 = int_to_ptr.vmem [resolvable:$true] %s2052_s8 }
 0x183   :  { %2329 = vmatprep.subr.bf16.mxu1 %v2631_v31  ;;  %v491_v31 = vrot.slane %v2958_v26, %v78_v16  ;;  %s2800_s9 = scalar_lea.vmem %s2053_s8, 896  ;;  %p2805_p11 = scmp.lt.s32.totalorder %s2053_s8, %s2053_s8 }
 0x184   :  { %p2801_p10 = scmp.ne.s32.totalorder %s2053_s8, %s2800_s9  ;;  %p2806_p12 = scmp.lt.s32.totalorder %s2800_s9, %s2800_s9 }
 0x185   :  { %1856 = vmatpush1.bf16.msra.mxu0 %v2628_v33 }
 0x186   :  { %2330 = vmatpush3.bf16.msra.mxu1 %v2632_v34  ;;  %1857 = vmatprep.subr.bf16.mxu0 %v2635_v36  ;;  %p2807_p13 = por %p2806_p12, %p2805_p11 }
 0x187   :  { %2331 = vmatprep.subr.bf16.mxu1 %v2636_v37 }
 0x188   :  { %p2808_p0 = pnand %p2807_p13, %p2801_p10 }
 0x189   :  { %1858 = vmatpush1.bf16.msra.mxu0 %v2633_v38 }
 0x18a   :  { %2332 = vmatpush3.bf16.msra.mxu1 %v2637_v39  ;;  %1859 = vmatprep.subr.bf16.mxu0 %v2640_v40 }
 0x18b   :  { %2333 = vmatprep.subr.bf16.mxu1 %v2641_v41 }
 0x18d   :  { %1860 = vmatpush1.bf16.msra.mxu0 %v2638_v42 }
 0x18e   :  { %2334 = vmatpush3.bf16.msra.mxu1 %v2642_v43  ;;  %1861 = vmatprep.subr.bf16.mxu0 %v2645_v44 }
 0x18f   :  { %2335 = vmatprep.subr.bf16.mxu1 %v2646_v45 }
 0x191   :  { %1862 = vmatpush1.bf16.msra.mxu0 %v2643_v15 }
 0x192   :  { %2336 = vmatpush3.bf16.msra.mxu1 %v2647_v46  ;;  %1863 = vmatprep.subr.bf16.mxu0 %v2650_v48 }
 0x193   :  { %2337 = vmatprep.subr.bf16.mxu1 %v2651_v49 }
 0x195   :  { %1864 = vmatpush1.bf16.msra.mxu0 %v2648_v35 }
 0x196   :  { %2338 = vmatpush3.bf16.msra.mxu1 %v2652_v51  ;;  %1865 = vmatprep.subr.bf16.mxu0 %v2655_v52 }
 0x197   :  { %2339 = vmatprep.subr.bf16.mxu1 %v2656_v53 }
 0x199   :  { %1866 = vmatpush1.bf16.msra.mxu0 %v2653_v54 }
 0x19a   :  { %2340 = vmatpush3.bf16.msra.mxu1 %v2657_v55  ;;  %1876 = vmatprep.subr.bf16.mxu0 %v2660_v56 }
 0x19c   :  { %1868 = vmatmul.mubr.bf16.vlgmr.msra.gmra.mrb[4].mxu0 %v2926_v32  ;;  %v2675_v32 = vld [vmem:[#allocation7 + $0x4ac] ss:$28 sps:$4 sm:$0xff]  }
 0x19d   :  { %1990 = vmatmul.mubr.bf16.vlgmr.msra.gmra.mrb[16].mxu1 %v2943_v50  ;;  %1877 = vmatpush1.bf16.msra.mxu0 %v2658_v57 }
 0x19e   :  { %1908 = vmatprep.mubr.bf16.mxu0 %v2934_v47  ;;  %1878 = vmatprep.subr.bf16.mxu0 %v2663_v58  ;;  %v2676_v47 = vld [vmem:[#allocation7 + $0x4e0] ss:$28 sps:$4 sm:$0xff]  }
 0x1a1   :  { %1879 = vmatpush1.bf16.msra.mxu0 %v2661_v59 }
 0x1a2   :  { %1880 = vmatprep.subr.bf16.mxu0 %v2666_v60 }
 0x1a5   :  { %1881 = vmatpush1.bf16.msra.mxu0 %v2664_v61 }
 0x1a6   :  { %1882 = vmatprep.subr.bf16.mxu0 %v2669_v62 }
 0x1a9   :  { %1883 = vmatpush1.bf16.msra.mxu0 %v2667_v63  ;;  %v510_v63 = vsub.s32 6, %v2905_v13 }
 0x1aa   :  { %1884 = vmatprep.subr.bf16.mxu0 %v2672_v0 }
 0x1ab   :  { %v511_v0 = vrot.slane %v2958_v26, %v510_v63 }
 0x1ad   :  { %1885 = vmatpush1.bf16.msra.mxu0 %v2670_v28 }
 0x1ae   :  { %1886 = vmatprep.subr.bf16.mxu0 %v2675_v32 }
 0x1b1   :  { %1887 = vmatpush1.bf16.msra.mxu0 %v2673_v1 }
 0x1b2   :  { %1888 = vmatprep.subr.bf16.mxu0 %v2678_v2 }
 0x1b5   :  { %1889 = vmatpush1.bf16.msra.mxu0 %v2676_v47 }
 0x1b6   :  { %1890 = vmatprep.subr.bf16.mxu0 %v2681_v3 }
 0x1b9   :  { %1891 = vmatpush1.bf16.msra.mxu0 %v2679_v4 }
 0x1ba   :  { %1892 = vmatprep.subr.bf16.mxu0 %v2684_v5 }
 0x1bd   :  { %1893 = vmatpush1.bf16.msra.mxu0 %v2682_v6 }
 0x1be   :  { %1894 = vmatprep.subr.bf16.mxu0 %v2687_v7 }
 0x1c1   :  { %1895 = vmatpush1.bf16.msra.mxu0 %v2685_v8 }
 0x1c2   :  { %1896 = vmatprep.subr.bf16.mxu0 %v2690_v9  ;;  %v502_v9 = vsub.s32 4, %v2905_v13 }
 0x1c5   :  { %1897 = vmatpush1.bf16.msra.mxu0 %v2688_v10  ;;  %v506_v10 = vsub.s32 5, %v2905_v13 }
 0x1c6   :  { %1898 = vmatprep.subr.bf16.mxu0 %v2693_v11  ;;  %v503_v11 = vrot.slane %v2958_v26, %v502_v9 }
 0x1c9   :  { %1899 = vmatpush1.bf16.msra.mxu0 %v2691_v12  ;;  %v507_v12 = vrot.slane %v2958_v26, %v506_v10 }
 0x1ca   :  { %1900 = vmatprep.subr.bf16.mxu0 %v2696_v17 }
 0x1cd   :  { %1901 = vmatpush1.bf16.msra.mxu0 %v2694_v18 }
 0x1ce   :  { %1902 = vmatprep.subr.bf16.mxu0 %v2699_v19 }
 0x1d1   :  { %1903 = vmatpush1.bf16.msra.mxu0 %v2697_v20 }
 0x1d2   :  { %1904 = vmatprep.subr.bf16.mxu0 %v2702_v21 }
 0x1d5   :  { %1905 = vmatpush1.bf16.msra.mxu0 %v2700_v22 }
 0x1d6   :  { %1906 = vmatprep.subr.bf16.mxu0 %v2705_v23 }
 0x1d9   :  { %1907 = vmatpush1.bf16.msra.mxu0 %v2703_v25 }
 0x1dc   :  { %1909 = vmatmul.mubr.bf16.vlgmr.msra.gmra.mrb[4].mxu0 %v2943_v50  ;;  %v499_v50 = vrot.slane %v2958_v26, %v86_v24 }
 0x22f   :  { %v1746_v33 = vpop.f32.mrb[0].mxu0  ;;  %v1828_v34 = vpop.f32.mrb[8].mxu1 }
 0x230   :  { %v2347_v36 = vadd.f32 %v1746_v33, %v487_v29  ;;  %v2349_v37 = vadd.f32 %v1828_v34, %v495_v30  ;;  %v1748_v38 = vpop.f32.mrb[1].mxu0  ;;  %v1830_v39 = vpop.f32.mrb[9].mxu1 }
 0x231   :  { %v2348_v40 = vadd.f32 %v1748_v38, %v491_v31  ;;  %v2350_v14 = vadd.f32 %v1830_v39, %v499_v50  ;;  %v1750_v41 = vpop.f32.mrb[2].mxu0  ;;  %v1832_v42 = vpop.f32.mrb[10].mxu1 }
 0x232   :  { %v2296_v43 = vmul.f32 -1.442695, %v2347_v36  ;;  %v2298_v27 = vmul.f32 -1.442695, %v2349_v37  ;;  %v1751_v44 = vpop.f32.mrb[3].mxu0  ;;  %v1833_v45 = vpop.f32.mrb[11].mxu1 }
 0x233   :  { %v2297_v15 = vmul.f32 -1.442695, %v2348_v40  ;;  %v2299_v16 = vmul.f32 -1.442695, %v2350_v14 }
 0x234   :  { %2706 = vpow2.f32 %v2296_v43 }
 0x235   :  { %2708 = vpow2.f32 %v2298_v27 }
 0x236   :  { %2710 = vpow2.f32 %v2297_v15 }
 0x237   :  { %2712 = vpow2.f32 %v2299_v16 }
 0x23e   :  { %v2707_v24 = vpop.eup %2706 }
 0x23f   :  { %v2709_v46 = vpop.eup %2708  ;;  %v2018_v48 = vadd.f32 1.0, %v2707_v24 }
 0x240   :  { %v2711_v49 = vpop.eup %2710  ;;  %v2020_v35 = vadd.f32 1.0, %v2709_v46 }
 0x241   :  { %v2713_v51 = vpop.eup %2712  ;;  %2714 = vrcp.f32 %v2018_v48  ;;  %v2019_v52 = vadd.f32 1.0, %v2711_v49 }
 0x242   :  { %2716 = vrcp.f32 %v2020_v35  ;;  %v2021_v53 = vadd.f32 1.0, %v2713_v51 }
 0x243   :  { %2718 = vrcp.f32 %v2019_v52 }
 0x244   :  { %2720 = vrcp.f32 %v2021_v53 }
 0x24b   :  { %v2715_v54 = vpop.eup %2714 }
 0x24c   :  { %v2717_v55 = vpop.eup %2716  ;;  %2039 = vst [vmem:[#allocation8] sm:$0xff] %v2715_v54 }
 0x24d   :  { %v2719_v56 = vpop.eup %2718  ;;  %2041 = vst [vmem:[#allocation8 + $0x10] sm:$0xff] %v2717_v55 }
 0x24e   :  { %v2721_v57 = vpop.eup %2720  ;;  %2040 = vst [vmem:[#allocation8 + $0x8] sm:$0xff] %v2719_v56 }
 0x24f   :  { %2042 = vst [vmem:[#allocation8 + $0x18] sm:$0xff] %v2721_v57 }
 0x250   :  { %v2319_v58 = vpop.f32.mrb[12].mxu1 }
 0x251   :  { %v2320_v59 = vpop.f32.mrb[13].mxu1 }
 0x252   :  { %v2321_v60 = vadd.f32 %v2320_v59, %v2319_v58  ;;  %v2322_v61 = vpop.f32.mrb[14].mxu1 }
 0x253   :  { %v2323_v62 = vpop.f32.mrb[15].mxu1 }
 0x254   :  { %v1952_v1 = vadd.f32 %v2321_v60, %v511_v0 }
 0x270   :  { %v2341_v28 = vpop.f32.mrb[16].mxu1 }
 0x271   :  { %v2342_v32 = vpop.f32.mrb[17].mxu1 }
 0x272   :  { %v2343_v2 = vadd.f32 %v2342_v32, %v2341_v28  ;;  %v2344_v47 = vpop.f32.mrb[18].mxu1 }
 0x273   :  { %v2345_v3 = vpop.f32.mrb[19].mxu1 }
 0x274   :  { %v1992_v4 = vadd.f32 %v2343_v2, %v1952_v1 }
 0x276   :  { %v2302_v5 = vmul.f32 -1.442695, %v1992_v4 }
 0x278   :  { %2722 = vpow2.f32 %v2302_v5 }
 0x282   :  { %v2723_v6 = vpop.eup %2722 }
 0x283   :  { %v2024_v7 = vadd.f32 1.0, %v2723_v6 }
 0x285   :  { %2724 = vrcp.f32 %v2024_v7 }
 0x28f   :  { %v2725_v8 = vpop.eup %2724 }
 0x290   :  { %2045 = vst [vmem:[#allocation8 + $0x30] sm:$0xff] %v2725_v8 }
 0x2af   :  { %v1910_v17 = vpop.f32.mrb[4].mxu0 }
 0x2b0   :  { %v2351_v18 = vadd.f32 %v1910_v17, %v503_v11  ;;  %v1912_v19 = vpop.f32.mrb[5].mxu0 }
 0x2b1   :  { %v2352_v20 = vadd.f32 %v1912_v19, %v507_v12  ;;  %v1914_v21 = vpop.f32.mrb[6].mxu0 }
 0x2b2   :  { %v2300_v22 = vmul.f32 -1.442695, %v2351_v18  ;;  %v1915_v23 = vpop.f32.mrb[7].mxu0 }
 0x2b3   :  { %v2301_v25 = vmul.f32 -1.442695, %v2352_v20 }
 0x2b4   :  { %2726 = vpow2.f32 %v2300_v22 }
 0x2b5   :  { %2728 = vpow2.f32 %v2301_v25 }
 0x2be   :  { %v2727_v29 = vpop.eup %2726 }
 0x2bf   :  { %v2729_v30 = vpop.eup %2728  ;;  %v2022_v31 = vadd.f32 1.0, %v2727_v29 }
 0x2c0   :  { %v2023_v50 = vadd.f32 1.0, %v2729_v30 }
 0x2c1   :  { %2730 = vrcp.f32 %v2022_v31 }
 0x2c2   :  { %2732 = vrcp.f32 %v2023_v50 }
 0x2cb   :  { %v2731_v13 = vpop.eup %2730 }
 0x2cc   :  { %v2733_v26 = vpop.eup %2732  ;;  %2043 = vst [vmem:[#allocation8 + $0x20] sm:$0xff] %v2731_v13 }
 0x2cd   :  { %2044 = vst [vmem:[#allocation8 + $0x28] sm:$0xff] %v2733_v26 }
 0x2ce   :  { %2811 = shalt.err (!%p2808_p0)
}
 0x2cf   :  { %s2812_s12 = scalar_lea.hbm %s2995_s5, 896 }
 0x2d0   :  { %p2813_p1 = scmp.ne.s32.totalorder %s2995_s5, %s2812_s12  ;;  %p2816_p2 = scmp.lt.u32.totalorder %s2812_s12, %s2995_s5 }
 0x2d2   :  { %p2818_p3 = pnand %p2816_p2, %p2813_p1 }
 0x2d4   :  { %2821 = shalt.err (!%p2818_p3)
}
 0x2d5   :  { %2055 = dma.vmem_to_hbm [thread:$0]  %s2053_s8, 896, %s2995_s5, [#allocation4]  }
 0x2d6   :  { %2826 = dma.done.wait [#allocation4], 896  }
 0x2d7   :  { %2827 = vsyncadd [#allocation4], 4294966400 }
 0x2d8   :  { %2059 = vsyncpa [#allocation3], 1 }
 0x2d9   :  { %2060 = vsyncpa [#allocation6], 1 }
 0x2da   :  { %2061 = vsyncpa [#allocation4], 1 }

</bundles_post_ra>
